<compile_context>
chip_gen: v7x
topology: tpu7x:2x2x1
jax: 0.10.0
libtpu: 0.0.40
codegen_flags: <defaults>
</compile_context>

<pallas_src>
import functools

import jax
import jax.numpy as jnp
from jax import lax
from jax.experimental import pallas as pl
from jax.experimental.pallas import tpu as pltpu

H = 15            # torch hidden sizes
H2 = 15
HID = 16          # padded hidden dim (sublane-friendly)

LANE = 128
MIN_GRID = 8      # keep >= 4 grid steps per TensorCore on v7x


def _round_up(a, b):
    return -(-a // b) * b


def _pick_tile(n, tile_n):
    """Batch (lane) tile: multiple of 128, <= tile_n, and small enough that the
    grid keeps >= MIN_GRID steps when N is large (megacore sharding)."""
    n128 = _round_up(max(n, 1), LANE)
    tile = min(_round_up(tile_n, LANE), n128)
    if n128 > MIN_GRID * LANE:
        tile = min(tile, _round_up(-(-n128 // MIN_GRID), LANE))
    return max(tile, LANE)


def _pick_chunk(tile):
    """Largest multiple of 128 that divides the tile and is <= 512 lanes."""
    for c in (512, 384, 256, 128):
        if c <= tile and tile % c == 0:
            return c
    return LANE


def mlp_kernel(x_ref, w_ref, p_ref, o_ref, *, chunk, nchunks, mxu_dtype):
    # ---- hoisted once per grid step (loop-invariant) ----
    w2 = w_ref[0].astype(mxu_dtype)                   # [HID, HID]
    w3 = w_ref[1].astype(mxu_dtype)
    w4 = w_ref[2].astype(mxu_dtype)                   # row 0 = fc4 weights
    p = p_ref[...]                                    # [HID, 8] f32
    w1b = jnp.broadcast_to(p[:, 0:1], (HID, chunk))   # fc1 weight column
    b1b = jnp.broadcast_to(p[:, 1:2], (HID, chunk))
    b2b = jnp.broadcast_to(p[:, 2:3], (HID, chunk))
    b3b = jnp.broadcast_to(p[:, 3:4], (HID, chunk))
    b4b = jnp.broadcast_to(p[0:1, 4:5], (1, chunk))

    # ---- register-resident sub-chunk loop over the lane tile ----
    def body(c, carry):
        off = pl.multiple_of(c * chunk, chunk)
        xc = x_ref[:, pl.ds(off, chunk)]              # [1, chunk]

        # fc1 (in_features=1): pure VPU broadcast multiply-add + tanh.
        h1 = jnp.tanh(w1b * xc + b1b)                 # [HID, chunk] f32

        # fc2 / fc3: 16x16 matmuls on the MXU (bf16 operands, f32 accumulate).
        h2 = jnp.maximum(
            jnp.dot(w2, h1.astype(mxu_dtype),
                    preferred_element_type=jnp.float32) + b2b, 0.0)
        h3 = jnp.tanh(
            jnp.dot(w3, h2.astype(mxu_dtype),
                    preferred_element_type=jnp.float32) + b3b)

        # fc4: padded 16x16 matmul; only row 0 is meaningful.
        z4 = jnp.dot(w4, h3.astype(mxu_dtype),
                     preferred_element_type=jnp.float32)      # [HID, chunk]
        o_ref[:, pl.ds(off, chunk)] = z4[0:1, :] + b4b        # [1, chunk]
        return carry

    lax.fori_loop(0, nchunks, body, 0, unroll=(nchunks <= 8))


def prepare_params(p):
    """Convert torch-convention params ([out,in] weights, [out] biases) into
    two packed, padded, feature-major arrays the kernel consumes."""
    def pad2(a, rows, cols):
        r, c = a.shape
        return jnp.pad(a, ((0, rows - r), (0, cols - c)))

    w2 = pad2(p["w2"], HID, HID)
    w3 = pad2(p["w3"], HID, HID)
    w4 = pad2(p["w4"], HID, HID)          # [1, H2] -> row 0 = fc4 weights
    W = jnp.stack([w2, w3, w4]).astype(jnp.float32)   # [3, HID, HID]

    P = jnp.zeros((HID, 8), jnp.float32)
    P = P.at[:H, 0].set(p["w1"][:, 0])    # fc1 weight (in_features == 1)
    P = P.at[:H, 1].set(p["b1"])
    P = P.at[:H, 2].set(p["b2"])
    P = P.at[:H2, 3].set(p["b3"])
    P = P.at[0, 4].set(p["b4"][0])
    return dict(W=W, P=P)


def net_forward(x, kparams, *, tile_n=64 * 1024, mxu_dtype=jnp.bfloat16):
    """x: [N, 1] float32.  kparams: output of prepare_params.  Returns [N, 1]."""
    n = x.shape[0]
    xt = x.reshape(1, n).astype(jnp.float32)          # free reshape, lane-dense

    tile = _pick_tile(n, tile_n)
    chunk = _pick_chunk(tile)
    nchunks = tile // chunk
    grid = (pl.cdiv(n, tile),)                        # partial edge block OK

    kernel = functools.partial(mlp_kernel, chunk=chunk, nchunks=nchunks,
                               mxu_dtype=mxu_dtype)

    in_specs = [
        pl.BlockSpec((1, tile), lambda i: (0, i)),            # x: tiled batch
        pl.BlockSpec((3, HID, HID), lambda i: (0, 0, 0)),     # resident weights
        pl.BlockSpec((HID, 8), lambda i: (0, 0)),             # resident vectors
    ]
    out_spec = pl.BlockSpec((1, tile), lambda i: (0, i))

    out = pl.pallas_call(
        kernel,
        out_shape=jax.ShapeDtypeStruct((1, n), jnp.float32),
        grid_spec=pltpu.PrefetchScalarGridSpec(
            num_scalar_prefetch=0,
            grid=grid,
            in_specs=in_specs,
            out_specs=out_spec,
        ),
        compiler_params=pltpu.CompilerParams(
            dimension_semantics=("parallel",)),       # megacore shard on v7x
    )(xt, kparams["W"], kparams["P"])

    return out.reshape(n, 1)                          # free reshape back


def init_params(key):
    """Torch-convention params mirroring nn.Linear default init."""
    def linear(key, fan_in, fan_out):
        kw, kb = jax.random.split(key)
        bound = 1.0 / jnp.sqrt(jnp.float32(fan_in))
        w = jax.random.uniform(kw, (fan_out, fan_in), jnp.float32, -bound, bound)
        b = jax.random.uniform(kb, (fan_out,), jnp.float32, -bound, bound)
        return w, b

    k1, k2, k3, k4 = jax.random.split(key, 4)
    w1, b1 = linear(k1, 1, H)
    w2, b2 = linear(k2, H, H)
    w3, b3 = linear(k3, H, H2)
    w4, b4 = linear(k4, H2, 1)
    return dict(w1=w1, b1=b1, w2=w2, b2=b2, w3=w3, b3=b3, w4=w4, b4=b4)


def reference_forward(x, p):
    h1 = jnp.tanh(x @ p["w1"].T + p["b1"])
    h2 = jnp.maximum(h1 @ p["w2"].T + p["b2"], 0.0)
    h3 = jnp.tanh(h2 @ p["w3"].T + p["b3"])
    return h3 @ p["w4"].T + p["b4"]


if __name__ == "__main__":
    key = jax.random.PRNGKey(0)
    kx, kx2, kp = jax.random.split(key, 3)
    params = init_params(kp)
    kparams = prepare_params(params)

    # Small batch, single grid step — exact (f32-MXU) path, tight tolerance.
    x = jax.random.normal(kx, (8, 1), jnp.float32)
    ref = reference_forward(x, params)
    out_f32 = jax.block_until_ready(net_forward(x, kparams, mxu_dtype=jnp.float32))
    assert out_f32.shape == (8, 1)
    assert jnp.allclose(out_f32, ref, atol=1e-4, rtol=1e-4)

    # Default bf16-MXU path (looser tolerance, bf16 operand rounding).
    out_bf = jax.block_until_ready(net_forward(x, kparams))
    assert jnp.allclose(out_bf, ref, atol=1e-1, rtol=1e-1)

    # Multi-step grid + inner chunk loop + partial trailing block
    # (N=3000 is not a multiple of the chosen tile; no host-side padding).
    x2 = jax.random.normal(kx2, (3000, 1), jnp.float32)
    ref2 = reference_forward(x2, params)
    out2 = jax.block_until_ready(
        net_forward(x2, kparams, tile_n=512, mxu_dtype=jnp.float32))
    assert out2.shape == (3000, 1)
    assert jnp.allclose(out2, ref2, atol=1e-4, rtol=1e-4)

    out2b = jax.block_until_ready(net_forward(x2, kparams, tile_n=512))
    assert jnp.allclose(out2b, ref2, atol=1e-1, rtol=1e-1)

    # TODO(synk): optional (8, N/8) batch layout would make the output store
    # sublane-dense as well (review item marked minor).
    print("KERNEL_OK")
</pallas_src>

<mosaic_0001>
module attributes {stable_mosaic.version = 11 : i64} {
  func.func @mlp_kernel(%arg0: i32, %arg1: memref<1x128xf32, #tpu.memory_space<vmem>>, %arg2: memref<3x16x16xf32, #tpu.memory_space<vmem>>, %arg3: memref<16x8xf32, #tpu.memory_space<vmem>>, %arg4: memref<1x128xf32, #tpu.memory_space<vmem>>) attributes {dimension_semantics = [#tpu.dimension_semantics<parallel>], iteration_bounds = array<i64: 1>, scalar_prefetch = 0 : i64, scratch_operands = 0 : i64, tpu.core_type = #tpu.core_type<tc>, window_params = [{transform_indices = @transform_0, window_bounds = array<i64: 1, 128>}, {pipeline_mode = #tpu.pipeline_mode<synchronous>, transform_indices = @transform_1, window_bounds = array<i64: 3, 16, 16>}, {pipeline_mode = #tpu.pipeline_mode<synchronous>, transform_indices = @transform_2, window_bounds = array<i64: 16, 8>}, {transform_indices = @transform_3, window_bounds = array<i64: 1, 128>}]} {
    %c0 = arith.constant 0 : index
    %c0_0 = arith.constant 0 : index
    %c0_1 = arith.constant 0 : index
    %0 = vector.load %arg2[%c0, %c0_0, %c0_1] : memref<3x16x16xf32, #tpu.memory_space<vmem>>, vector<1x16x16xf32>
    %1 = vector.shape_cast %0 : vector<1x16x16xf32> to vector<16x16xf32>
    %c1 = arith.constant 1 : index
    %c0_2 = arith.constant 0 : index
    %c0_3 = arith.constant 0 : index
    %2 = vector.load %arg2[%c1, %c0_2, %c0_3] : memref<3x16x16xf32, #tpu.memory_space<vmem>>, vector<1x16x16xf32>
    %3 = vector.shape_cast %2 : vector<1x16x16xf32> to vector<16x16xf32>
    %c2 = arith.constant 2 : index
    %c0_4 = arith.constant 0 : index
    %c0_5 = arith.constant 0 : index
    %4 = vector.load %arg2[%c2, %c0_4, %c0_5] : memref<3x16x16xf32, #tpu.memory_space<vmem>>, vector<1x16x16xf32>
    %5 = vector.shape_cast %4 : vector<1x16x16xf32> to vector<16x16xf32>
    %c0_6 = arith.constant 0 : index
    %c0_7 = arith.constant 0 : index
    %6 = vector.load %arg3[%c0_6, %c0_7] : memref<16x8xf32, #tpu.memory_space<vmem>>, vector<16x8xf32>
    %7 = vector.extract_strided_slice %6 {offsets = [0, 0], sizes = [16, 1], strides = [1, 1]} : vector<16x8xf32> to vector<16x1xf32>
    %8 = vector.shape_cast %7 : vector<16x1xf32> to vector<16x1xf32>
    %9 = vector.broadcast %8 : vector<16x1xf32> to vector<16x128xf32>
    %10 = vector.extract_strided_slice %6 {offsets = [0, 1], sizes = [16, 1], strides = [1, 1]} : vector<16x8xf32> to vector<16x1xf32>
    %11 = vector.shape_cast %10 : vector<16x1xf32> to vector<16x1xf32>
    %12 = vector.broadcast %11 : vector<16x1xf32> to vector<16x128xf32>
    %13 = vector.extract_strided_slice %6 {offsets = [0, 2], sizes = [16, 1], strides = [1, 1]} : vector<16x8xf32> to vector<16x1xf32>
    %14 = vector.shape_cast %13 : vector<16x1xf32> to vector<16x1xf32>
    %15 = vector.broadcast %14 : vector<16x1xf32> to vector<16x128xf32>
    %16 = vector.extract_strided_slice %6 {offsets = [0, 3], sizes = [16, 1], strides = [1, 1]} : vector<16x8xf32> to vector<16x1xf32>
    %17 = vector.shape_cast %16 : vector<16x1xf32> to vector<16x1xf32>
    %18 = vector.broadcast %17 : vector<16x1xf32> to vector<16x128xf32>
    %19 = vector.extract_strided_slice %6 {offsets = [0, 4], sizes = [1, 1], strides = [1, 1]} : vector<16x8xf32> to vector<1x1xf32>
    %20 = vector.shape_cast %19 : vector<1x1xf32> to vector<1x1xf32>
    %21 = vector.broadcast %20 : vector<1x1xf32> to vector<1x128xf32>
    %c0_i32 = arith.constant 0 : i32
    %c128_i32 = arith.constant 128 : i32
    %22 = arith.muli %c0_i32, %c128_i32 : i32
    %23 = tpu.assume_multiple %22, 128 : i32
    %c0_8 = arith.constant 0 : index
    %24 = arith.index_cast %23 : i32 to index
    %25 = vector.load %arg1[%c0_8, %24] : memref<1x128xf32, #tpu.memory_space<vmem>>, vector<1x128xf32>
    %26 = vector.broadcast %25 : vector<1x128xf32> to vector<16x128xf32>
    %27 = arith.mulf %9, %26 : vector<16x128xf32>
    %28 = arith.addf %27, %12 : vector<16x128xf32>
    %29 = math.tanh %28 : vector<16x128xf32>
    %cst = arith.constant dense<0.000000e+00> : vector<16x128xf32>
    %30 = tpu.matmul %1, %29, %cst {dimension_numbers = #tpu.dot_dimension_numbers<[1], [0], [0], [1], [0, 0, 1, 1], [], []>} : vector<16x16xf32>, vector<16x128xf32>, vector<16x128xf32> -> vector<16x128xf32>
    %31 = arith.addf %30, %15 : vector<16x128xf32>
    %cst_9 = arith.constant 0.000000e+00 : f32
    %32 = vector.broadcast %cst_9 : f32 to vector<16x128xf32>
    %33 = arith.maximumf %31, %32 : vector<16x128xf32>
    %cst_10 = arith.constant dense<0.000000e+00> : vector<16x128xf32>
    %34 = tpu.matmul %3, %33, %cst_10 {dimension_numbers = #tpu.dot_dimension_numbers<[1], [0], [0], [1], [0, 0, 1, 1], [], []>} : vector<16x16xf32>, vector<16x128xf32>, vector<16x128xf32> -> vector<16x128xf32>
    %35 = arith.addf %34, %18 : vector<16x128xf32>
    %36 = math.tanh %35 : vector<16x128xf32>
    %cst_11 = arith.constant dense<0.000000e+00> : vector<16x128xf32>
    %37 = tpu.matmul %5, %36, %cst_11 {dimension_numbers = #tpu.dot_dimension_numbers<[1], [0], [0], [1], [0, 0, 1, 1], [], []>} : vector<16x16xf32>, vector<16x128xf32>, vector<16x128xf32> -> vector<16x128xf32>
    %38 = vector.extract_strided_slice %37 {offsets = [0, 0], sizes = [1, 128], strides = [1, 1]} : vector<16x128xf32> to vector<1x128xf32>
    %39 = arith.addf %38, %21 : vector<1x128xf32>
    %c0_12 = arith.constant 0 : index
    %40 = arith.index_cast %23 : i32 to index
    %41 = vector.load %arg4[%c0_12, %40] : memref<1x128xf32, #tpu.memory_space<vmem>>, vector<1x128xf32>
    tpu.vector_store %arg4[%c0_12, %40], %39 {strides = array<i32>} : memref<1x128xf32, #tpu.memory_space<vmem>>, vector<1x128xf32>,
    %c1_i32 = arith.constant 1 : i32
    return
  }
  func.func @transform_0(%arg0: i32) -> (i32, i32) {
    %c0_i32 = arith.constant 0 : i32
    %c0_i32_0 = arith.constant 0 : i32
    return %c0_i32, %arg0 : i32, i32
  }
  func.func @transform_1(%arg0: i32) -> (i32, i32, i32) {
    %c0_i32 = arith.constant 0 : i32
    %c0_i32_0 = arith.constant 0 : i32
    %c0_i32_1 = arith.constant 0 : i32
    %c0_i32_2 = arith.constant 0 : i32
    return %c0_i32, %c0_i32_0, %c0_i32_1 : i32, i32, i32
  }
  func.func @transform_2(%arg0: i32) -> (i32, i32) {
    %c0_i32 = arith.constant 0 : i32
    %c0_i32_0 = arith.constant 0 : i32
    %c0_i32_1 = arith.constant 0 : i32
    return %c0_i32, %c0_i32_0 : i32, i32
  }
  func.func @transform_3(%arg0: i32) -> (i32, i32) {
    %c0_i32 = arith.constant 0 : i32
    %c0_i32_0 = arith.constant 0 : i32
    return %c0_i32, %arg0 : i32, i32
  }
}

</mosaic_0001>

<bundles_post_ra>
// kernel: tpu_custom_call.1
= control target key start
LH: loop header
LB: loop body
LE: loop exit
PB: predicated region body
PF: predicated region fallthrough
CT: control target
= control target key end

     0   :  { %8 = vsyncpa [#allocation3], 0  ;;  %s547_s0 = inlined_call_operand.vmem [shape: f32[1,8], index: 0, kind: input, shape index: {}]   ;;  %s548_s1 = inlined_call_operand.hbm [shape: f32[3,16,16], index: 1, kind: input, shape index: {}]   ;;  %s549_s2 = inlined_call_operand.vmem [shape: f32[16,8], index: 2, kind: input, shape index: {}]   ;;  %s550_s3 = inlined_call_operand.hbm [shape: f32[1,8], index: 3, kind: output, shape index: {}]  }
   0x1   :  { %9 = vsyncpa [#allocation4], 0  ;;  %s479_s12 = smov [#allocation2]   ;;  %s431_s16 = scalar_lea.hbm %s548_s1, 768 }
   0x2   :  { %s17_s13 = sshll.u32 %s479_s12, 4  ;;  %p432_p0 = scmp.ne.s32.totalorder %s548_s1, %s431_s16  ;;  %s18_s13 = int_to_ptr.vmem [resolvable:$true] %s17_s13 }
   0x3   :  { %p435_p1 = scmp.lt.u32.totalorder %s431_s16, %s548_s1 }
   0x5   :  { %p437_p2 = pnand %p435_p1, %p432_p0 }
   0x7   :  { %440 = shalt.err (!%p437_p2)
}
   0x8   :  { %s441_s21 = scalar_lea.vmem %s18_s13, 768  ;;  %p446_p4 = scmp.lt.s32.totalorder %s18_s13, %s18_s13 }
   0x9   :  { %p442_p3 = scmp.ne.s32.totalorder %s18_s13, %s441_s21  ;;  %p447_p5 = scmp.lt.s32.totalorder %s441_s21, %s441_s21 }
   0xb   :  { %p448_p6 = por %p447_p5, %p446_p4 }
   0xd   :  { %p449_p7 = pnand %p448_p6, %p442_p3 }
   0xf   :  { %452 = shalt.err (!%p449_p7)
}
  0x10   :  { %s480_s22 = smov 128   ;;  %s481_s23 = smov 8  }
  0x11   :  { %23 = dma.hbm_to_vmem [thread:$0]  %s548_s1, 768, %s18_s13, [#allocation3], %s480_s22, %s480_s22, %s481_s23  }
  0x12   :  { %475 = dma.done.wait [#allocation3], 768  }
  0x13   :  { %476 = vsyncadd [#allocation3], 4294966528  ;;  %v482_v0 = vmov 1   ;;  %v483_v1 = vmov 0   ;;  %v37_v2 = vld [vmem:[%s549_s2] sm:$0xff]  ;;  %v38_v3 = vld [vmem:[%s549_s2 + $0x8] sm:$0xff] }
  0x14   :  { %416 = vset.pattern.permute.xlu1 %v482_v0  ;;  %415 = vset.pattern.permute.xlu0 %v483_v1  ;;  %v29_v4 = vld [vmem:[#allocation2] sm:$0xff]  ;;  %vm90_vm0 = vcmask 130048   ;;  %v484_v5 = vmov 2   ;;  %v30_v18 = vld [vmem:[#allocation2 + $0x8] sm:$0xff]  ;;  %v32_v19 = vld [vmem:[#allocation2 + $0x10] sm:$0xff]  ;;  %v485_v20 = vmov 3  }
  0x15   :  { %50 = vperm.xlu1 %416, %v37_v2   ;;  %41 = vperm.xlu0 %415, %v37_v2   ;;  %v354_v6 = vld [vmem:[%s547_s0] ss:$0 sm:$0xff]  ;;  %v33_v30 = vld [vmem:[#allocation2 + $0x18] sm:$0xff]  ;;  %v486_v32 = vmov 4   ;;  %v36_v42 = vld [vmem:[#allocation2 + $0x28] sm:$0xff]  ;;  %s487_s0 = smov [#allocation5]  }
  0x16   :  { %377 = vmatprep.mubr.msk.f32.mxu0 %vm90_vm0, %v29_v4  ;;  %384 = vmatprep.mubr.msk.f32.mxu1 %vm90_vm0, %v32_v19  ;;  %v35_v31 = vld [vmem:[#allocation2 + $0x20] sm:$0xff]  ;;  %s345_s2 = sshll.u32 %s487_s0, 4  ;;  %s346_s2 = int_to_ptr.vmem [resolvable:$true] %s345_s2 }
  0x17   :  { %s453_s4 = scalar_lea.vmem %s346_s2, 16  ;;  %s457_s5 = scalar_lea.vmem %s346_s2, 32 }
  0x18   :  { %p454_p8 = scmp.ne.s32.totalorder %s346_s2, %s453_s4  ;;  %p458_p9 = scmp.lt.s32.totalorder %s346_s2, %s346_s2 }
  0x19   :  { %54 = vperm.xlu1 %416, %v38_v3   ;;  %46 = vperm.xlu0 %415, %v38_v3   ;;  %p459_p10 = scmp.lt.s32.totalorder %s457_s5, %s453_s4 }
  0x1b   :  { %p460_p11 = por %p459_p10, %p458_p9 }
  0x1d   :  { %418 = vset.pattern.permute.xlu1 %v484_v5  ;;  %417 = vset.pattern.permute.xlu0 %v484_v5  ;;  %p461_p12 = pnand %p460_p11, %p454_p8 }
  0x1e   :  { %62 = vperm.xlu1 %418, %v38_v3   ;;  %58 = vperm.xlu0 %417, %v37_v2  }
  0x22   :  { %420 = vset.pattern.permute.xlu0 %v485_v20  ;;  %419 = vset.pattern.permute.xlu1 %v485_v20 }
  0x23   :  { %70 = vperm.xlu0 %420, %v38_v3   ;;  %66 = vperm.xlu1 %419, %v37_v2  }
  0x27   :  { %421 = vset.pattern.permute.xlu1 %v486_v32  ;;  %422 = vset.pattern.permute.xlu0 %v486_v32 }
  0x28   :  { %74 = vperm.xlu1 %421, %v37_v2  }
  0x94   :  { %v51_v7 = vpop.permute.xlu1 %50  ;;  %v42_v8 = vpop.permute.xlu0 %41 }
  0x95   :  { %v84_v9 = vmul.f32 %v354_v6, %v42_v8 }
  0x97   :  { %v86_v10 = vadd.f32 %v84_v9, %v51_v7 }
  0x98   :  { %v47_v11 = vpop.permute.xlu0 %46  ;;  %v55_v13 = vpop.permute.xlu1 %54 }
  0x99   :  { %v85_v12 = vmul.f32 %v354_v6, %v47_v11  ;;  %423 = vtanh.f32 %v86_v10 }
  0x9b   :  { %v87_v14 = vadd.f32 %v85_v12, %v55_v13 }
  0x9d   :  { %425 = vtanh.f32 %v87_v14  ;;  %v63_v21 = vpop.permute.xlu1 %62  ;;  %v59_v22 = vpop.permute.xlu0 %58 }
  0xa2   :  { %v71_v33 = vpop.permute.xlu0 %70  ;;  %v67_v34 = vpop.permute.xlu1 %66 }
  0xa3   :  { %v424_v15 = vpop.eup %423 }
  0xa7   :  { %v426_v16 = vpop.eup %425  ;;  %v75_v43 = vpop.permute.xlu1 %74 }
  0xa8   :  { %v394_v17 = vpack.c.bf16 %v426_v16, %v424_v15 }
  0xaa   :  { %395 = vmatprep.subr.bf16.mxu0 %v394_v17 }
  0xab   :  { %397 = vmatpush3.bf16.msra.mxu0 %v394_v17 }
  0xae   :  { %378 = vmatmul.mubr.msk.f32.vlgmr.msra.gmra.mrb[0].mxu0 %vm90_vm0, %v30_v18 }
  0xaf   :  { %391 = vmatprep.mubr.msk.f32.mxu0 %vm90_vm0, %v35_v31 }
 0x181   :  { %v379_v23 = vpop.f32.mrb[0].mxu0 }
 0x182   :  { %v169_v24 = vadd.f32 %v379_v23, %v63_v21  ;;  %v163_v25 = vpop.f32.mrb[1].mxu0 }
 0x183   :  { %v164_v26 = vadd.f32 %v163_v25, %v59_v22 }
 0x184   :  { %v173_v27 = vmax.f32 %v169_v24, 0.0 }
 0x185   :  { %v172_v28 = vmax.f32 %v164_v26, 0.0 }
 0x187   :  { %v398_v29 = vpack.c.bf16 %v173_v27, %v172_v28 }
 0x189   :  { %399 = vmatprep.subr.bf16.mxu1 %v398_v29 }
 0x18a   :  { %401 = vmatpush3.bf16.msra.mxu1 %v398_v29 }
 0x18d   :  { %385 = vmatmul.mubr.msk.f32.vlgmr.msra.gmra.mrb[0].mxu1 %vm90_vm0, %v33_v30 }
 0x260   :  { %v386_v35 = vpop.f32.mrb[0].mxu1 }
 0x261   :  { %v252_v36 = vadd.f32 %v386_v35, %v71_v33  ;;  %v246_v37 = vpop.f32.mrb[1].mxu1 }
 0x262   :  { %v247_v38 = vadd.f32 %v246_v37, %v67_v34 }
 0x263   :  { %427 = vtanh.f32 %v252_v36 }
 0x264   :  { %429 = vtanh.f32 %v247_v38 }
 0x26d   :  { %v428_v39 = vpop.eup %427 }
 0x26e   :  { %v430_v40 = vpop.eup %429 }
 0x26f   :  { %v402_v41 = vpack.c.bf16 %v428_v39, %v430_v40 }
 0x271   :  { %403 = vmatprep.subr.bf16.mxu0 %v402_v41 }
 0x272   :  { %405 = vmatpush3.bf16.msra.mxu0 %v402_v41 }
 0x275   :  { %392 = vmatmul.mubr.msk.f32.vlgmr.msra.gmra.mrb[2].mxu0 %vm90_vm0, %v36_v42 }
 0x348   :  { %v393_v44 = vpop.f32.mrb[2].mxu0 }
 0x349   :  { %v329_v45 = vpop.f32.mrb[3].mxu0 }
 0x34a   :  { %v337_v46 = vadd.f32 %v329_v45, %v75_v43 }
 0x34c   :  { %338 = vst [vmem:[#allocation5] sm:$0x1] %v337_v46 }
 0x34d   :  { %464 = shalt.err (!%p461_p12)
}
 0x34e   :  { %s465_s8 = scalar_lea.hbm %s550_s3, 16 }
 0x34f   :  { %p466_p13 = scmp.ne.s32.totalorder %s550_s3, %s465_s8  ;;  %p469_p0 = scmp.lt.u32.totalorder %s465_s8, %s550_s3 }
 0x351   :  { %p471_p1 = pnand %p469_p0, %p466_p13 }
 0x353   :  { %474 = shalt.err (!%p471_p1)
}
 0x354   :  { %348 = dma.vmem_to_hbm [thread:$0]  %s346_s2, 16, %s550_s3, [#allocation4]  }
 0x355   :  { %477 = dma.done.wait [#allocation4], 16  }
 0x356   :  { %478 = vsyncadd [#allocation4], 4294967280 }
 0x357   :  { %352 = vsyncpa [#allocation3], 1 }
 0x358   :  { %353 = vsyncpa [#allocation4], 1 }

</bundles_post_ra>
